<compile_context>
chip_gen: v6e
topology: v6e:2x2x1
jax: 0.10.0
libtpu: 0.0.40
codegen_flags: <defaults>
</compile_context>

<pallas_src>
import math
import numpy as np
import jax
import jax.numpy as jnp
from jax.experimental import pallas as pl
from jax.experimental.pallas import tpu as pltpu  # noqa: F401  (TPU backend assumed)

# ---- model hyper-params (small, consistent with the module) ----
B, S, E = 2, 8, 32
N_HEADS = 4
HEAD_DIM = E // N_HEADS
POSFF_DIM = 64
LN_EPS = 1e-5
SCALE = 1.0 / math.sqrt(float(E))  # module divides energy by embed_dim ** 0.5


def _layernorm(x, gamma, beta, eps=LN_EPS):
    mu = jnp.mean(x, axis=-1, keepdims=True)
    var = jnp.mean((x - mu) ** 2, axis=-1, keepdims=True)
    return (x - mu) * jax.lax.rsqrt(var + eps) * gamma + beta


def encoder_layer_kernel(
    x_ref,        # (B*S, E)
    wqkv_ref,     # (E, 3E)   = [wq | wk | wv]
    bqkv_ref,     # (1, 3E)   = [bq | bk | bv]
    wo_ref,       # (E, E)
    w1_ref,       # (E, POSFF_DIM)
    b1_ref,       # (1, POSFF_DIM)
    w2_ref,       # (POSFF_DIM, E)
    vec_ref,      # (6, E)    rows = [bo, g1, be1, b2, g2, be2]
    out_ref,      # (B*S, E)
):
    x = x_ref[...]  # (B*S, E)

    # ---- fused Q|K|V projection: one (B*S,E)@(E,3E) MXU matmul ----
    qkv = jnp.dot(x, wqkv_ref[...], preferred_element_type=jnp.float32) + bqkv_ref[...]
    q = qkv[:, 0 * E:1 * E] * SCALE   # fold the 1/sqrt(E) scale into q (single VPU mult)
    k = qkv[:, 1 * E:2 * E]
    v = qkv[:, 2 * E:3 * E]

    # ---- head-batched attention: view heads as a (N_HEADS*B, S, Hd) batch ----
    def split_heads(t):  # (B*S, E) -> (N_HEADS*B, S, Hd); lane slices + major concat
        t3 = t.reshape(B, S, E)
        return jnp.concatenate(
            [t3[:, :, h * HEAD_DIM:(h + 1) * HEAD_DIM] for h in range(N_HEADS)],
            axis=0,
        )

    qh, kh, vh = split_heads(q), split_heads(k), split_heads(v)

    energy = jnp.einsum("bqd,bkd->bqk", qh, kh, preferred_element_type=jnp.float32)
    energy = energy - jnp.max(energy, axis=-1, keepdims=True)
    p = jnp.exp(energy)
    attn = p / jnp.sum(p, axis=-1, keepdims=True)  # exact softmax (keeps 1e-5 tolerance)
    weighted = jnp.einsum("bqk,bkd->bqd", attn, vh, preferred_element_type=jnp.float32)

    # (N_HEADS*B, S, Hd) -> head-concat layout (B*S, E)
    weighted = jnp.concatenate(
        [weighted[h * B:(h + 1) * B] for h in range(N_HEADS)], axis=-1
    ).reshape(B * S, E)

    # ---- packed vector slab ----
    vecs = vec_ref[...]
    bo = vecs[0:1, :]
    g1 = vecs[1:2, :]
    be1 = vecs[2:3, :]
    b2 = vecs[3:4, :]
    g2 = vecs[4:5, :]
    be2 = vecs[5:6, :]

    # ---- output projection + residual + LayerNorm 1 ----
    att_out = jnp.dot(weighted, wo_ref[...], preferred_element_type=jnp.float32) + bo
    ln1 = _layernorm(x + att_out, g1, be1)

    # ---- position-wise feed-forward ----
    ff1 = jnp.maximum(
        jnp.dot(ln1, w1_ref[...], preferred_element_type=jnp.float32) + b1_ref[...], 0.0
    )
    ff2 = jnp.dot(ff1, w2_ref[...], preferred_element_type=jnp.float32) + b2

    # ---- residual + LayerNorm 2 ----
    out_ref[...] = _layernorm(ln1 + ff2, g2, be2)


def encoder_layer(x, params):
    (wq, bq, wk, bk, wv, bv, wo, bo, g1, be1, w1, b1, w2, b2, g2, be2) = params

    # Pack 16 tiny parameter arrays into 7 inputs (fewer, larger DMAs; fused QKV matmul).
    w_qkv = jnp.concatenate([wq, wk, wv], axis=1)                 # (E, 3E)
    b_qkv = jnp.concatenate([bq, bk, bv], axis=1)                 # (1, 3E)
    vecs = jnp.concatenate([bo, g1, be1, b2, g2, be2], axis=0)    # (6, E)

    # Collapse the grid: whole (B,S,E) tensor processed in one invocation as (B*S, E).
    x2d = x.reshape(B * S, E)

    out2d = pl.pallas_call(
        encoder_layer_kernel,
        out_shape=jax.ShapeDtypeStruct((B * S, E), jnp.float32),
    )(x2d, w_qkv, b_qkv, wo, w1, b1, w2, vecs)

    return out2d.reshape(B, S, E)


def _reference(x, params):
    (wq, bq, wk, bk, wv, bv, wo, bo, g1, be1, w1, b1, w2, b2, g2, be2) = params
    q = x @ wq + bq
    k = x @ wk + bk
    v = x @ wv + bv

    def split(t):
        return t.reshape(B, S, N_HEADS, HEAD_DIM).transpose(0, 2, 1, 3)

    qh, kh, vh = split(q), split(k), split(v)
    energy = jnp.einsum("bhqd,bhkd->bhqk", qh, kh) / math.sqrt(float(E))
    attn = jax.nn.softmax(energy, axis=-1)
    w = jnp.einsum("bhqk,bhkd->bhqd", attn, vh)
    w = w.transpose(0, 2, 1, 3).reshape(B, S, E)
    att_out = w @ wo + bo
    ln1 = _layernorm(x + att_out, g1, be1)
    ff = jnp.maximum(ln1 @ w1 + b1, 0.0) @ w2 + b2
    return _layernorm(ln1 + ff, g2, be2)


def _init_params(key):
    keys = jax.random.split(key, 12)

    def lin(kw, kb, fan_in, fan_out):
        bound = 1.0 / math.sqrt(fan_in)
        w = jax.random.uniform(kw, (fan_in, fan_out), jnp.float32, -bound, bound)
        b = jax.random.uniform(kb, (1, fan_out), jnp.float32, -bound, bound)
        return w, b

    wq, bq = lin(keys[0], keys[1], E, E)
    wk, bk = lin(keys[2], keys[3], E, E)
    wv, bv = lin(keys[4], keys[5], E, E)
    wo, bo = lin(keys[6], keys[7], E, E)
    w1, b1 = lin(keys[8], keys[9], E, POSFF_DIM)
    w2, b2 = lin(keys[10], keys[11], POSFF_DIM, E)
    g1 = jnp.ones((1, E), jnp.float32)
    be1 = jnp.zeros((1, E), jnp.float32)
    g2 = jnp.ones((1, E), jnp.float32)
    be2 = jnp.zeros((1, E), jnp.float32)
    return (wq, bq, wk, bk, wv, bv, wo, bo, g1, be1, w1, b1, w2, b2, g2, be2)


if __name__ == "__main__":
    key = jax.random.PRNGKey(0)
    kx, kp = jax.random.split(key)
    x = jax.random.normal(kx, (B, S, E), jnp.float32)
    params = _init_params(kp)

    out = encoder_layer(x, params)
    out = jax.block_until_ready(out)

    ref = jax.block_until_ready(_reference(x, params))
    np.testing.assert_allclose(np.asarray(out), np.asarray(ref), rtol=1e-5, atol=1e-5)

    print("KERNEL_OK")
</pallas_src>

<mosaic_0001>
module attributes {stable_mosaic.version = 11 : i64} {
  func.func @encoder_layer_kernel(%arg0: memref<16x32xf32, #tpu.memory_space<vmem>>, %arg1: memref<32x96xf32, #tpu.memory_space<vmem>>, %arg2: memref<1x96xf32, #tpu.memory_space<vmem>>, %arg3: memref<32x32xf32, #tpu.memory_space<vmem>>, %arg4: memref<32x64xf32, #tpu.memory_space<vmem>>, %arg5: memref<1x64xf32, #tpu.memory_space<vmem>>, %arg6: memref<64x32xf32, #tpu.memory_space<vmem>>, %arg7: memref<6x32xf32, #tpu.memory_space<vmem>>, %arg8: memref<16x32xf32, #tpu.memory_space<vmem>>) attributes {dimension_semantics = [], scalar_prefetch = 0 : i64, scratch_operands = 0 : i64, tpu.core_type = #tpu.core_type<tc>} {
    %c0 = arith.constant 0 : index
    %c0_0 = arith.constant 0 : index
    %0 = vector.load %arg0[%c0, %c0_0] : memref<16x32xf32, #tpu.memory_space<vmem>>, vector<16x32xf32>
    %c0_1 = arith.constant 0 : index
    %c0_2 = arith.constant 0 : index
    %1 = vector.load %arg1[%c0_1, %c0_2] : memref<32x96xf32, #tpu.memory_space<vmem>>, vector<32x96xf32>
    %cst = arith.constant dense<0.000000e+00> : vector<16x96xf32>
    %2 = tpu.matmul %0, %1, %cst {dimension_numbers = #tpu.dot_dimension_numbers<[1], [0], [0], [1], [0, 0, 1, 1], [], []>} : vector<16x32xf32>, vector<32x96xf32>, vector<16x96xf32> -> vector<16x96xf32>
    %c0_3 = arith.constant 0 : index
    %c0_4 = arith.constant 0 : index
    %3 = vector.load %arg2[%c0_3, %c0_4] : memref<1x96xf32, #tpu.memory_space<vmem>>, vector<1x96xf32>
    %4 = vector.broadcast %3 : vector<1x96xf32> to vector<16x96xf32>
    %5 = arith.addf %2, %4 : vector<16x96xf32>
    %6 = vector.extract_strided_slice %5 {offsets = [0, 0], sizes = [16, 32], strides = [1, 1]} : vector<16x96xf32> to vector<16x32xf32>
    %cst_5 = arith.constant 0.176776692 : f32
    %7 = vector.broadcast %cst_5 : f32 to vector<16x32xf32>
    %8 = arith.mulf %6, %7 : vector<16x32xf32>
    %9 = vector.extract_strided_slice %5 {offsets = [0, 32], sizes = [16, 32], strides = [1, 1]} : vector<16x96xf32> to vector<16x32xf32>
    %10 = vector.extract_strided_slice %5 {offsets = [0, 64], sizes = [16, 32], strides = [1, 1]} : vector<16x96xf32> to vector<16x32xf32>
    %11 = vector.shape_cast %8 : vector<16x32xf32> to vector<2x8x32xf32>
    %12 = vector.extract_strided_slice %11 {offsets = [0, 0, 0], sizes = [2, 8, 8], strides = [1, 1, 1]} : vector<2x8x32xf32> to vector<2x8x8xf32>
    %13 = vector.extract_strided_slice %11 {offsets = [0, 0, 8], sizes = [2, 8, 8], strides = [1, 1, 1]} : vector<2x8x32xf32> to vector<2x8x8xf32>
    %14 = vector.extract_strided_slice %11 {offsets = [0, 0, 16], sizes = [2, 8, 8], strides = [1, 1, 1]} : vector<2x8x32xf32> to vector<2x8x8xf32>
    %15 = vector.extract_strided_slice %11 {offsets = [0, 0, 24], sizes = [2, 8, 8], strides = [1, 1, 1]} : vector<2x8x32xf32> to vector<2x8x8xf32>
    %16 = tpu.concatenate %12, %13, %14, %15 in 0 : vector<2x8x8xf32>, vector<2x8x8xf32>, vector<2x8x8xf32>, vector<2x8x8xf32> -> vector<8x8x8xf32>
    %17 = vector.shape_cast %9 : vector<16x32xf32> to vector<2x8x32xf32>
    %18 = vector.extract_strided_slice %17 {offsets = [0, 0, 0], sizes = [2, 8, 8], strides = [1, 1, 1]} : vector<2x8x32xf32> to vector<2x8x8xf32>
    %19 = vector.extract_strided_slice %17 {offsets = [0, 0, 8], sizes = [2, 8, 8], strides = [1, 1, 1]} : vector<2x8x32xf32> to vector<2x8x8xf32>
    %20 = vector.extract_strided_slice %17 {offsets = [0, 0, 16], sizes = [2, 8, 8], strides = [1, 1, 1]} : vector<2x8x32xf32> to vector<2x8x8xf32>
    %21 = vector.extract_strided_slice %17 {offsets = [0, 0, 24], sizes = [2, 8, 8], strides = [1, 1, 1]} : vector<2x8x32xf32> to vector<2x8x8xf32>
    %22 = tpu.concatenate %18, %19, %20, %21 in 0 : vector<2x8x8xf32>, vector<2x8x8xf32>, vector<2x8x8xf32>, vector<2x8x8xf32> -> vector<8x8x8xf32>
    %23 = vector.shape_cast %10 : vector<16x32xf32> to vector<2x8x32xf32>
    %24 = vector.extract_strided_slice %23 {offsets = [0, 0, 0], sizes = [2, 8, 8], strides = [1, 1, 1]} : vector<2x8x32xf32> to vector<2x8x8xf32>
    %25 = vector.extract_strided_slice %23 {offsets = [0, 0, 8], sizes = [2, 8, 8], strides = [1, 1, 1]} : vector<2x8x32xf32> to vector<2x8x8xf32>
    %26 = vector.extract_strided_slice %23 {offsets = [0, 0, 16], sizes = [2, 8, 8], strides = [1, 1, 1]} : vector<2x8x32xf32> to vector<2x8x8xf32>
    %27 = vector.extract_strided_slice %23 {offsets = [0, 0, 24], sizes = [2, 8, 8], strides = [1, 1, 1]} : vector<2x8x32xf32> to vector<2x8x8xf32>
    %28 = tpu.concatenate %24, %25, %26, %27 in 0 : vector<2x8x8xf32>, vector<2x8x8xf32>, vector<2x8x8xf32>, vector<2x8x8xf32> -> vector<8x8x8xf32>
    "tpu.trace_start"() <{level = 10 : i32, message = "bqd,bkd->bqk"}> : () -> ()
    %cst_6 = arith.constant dense<0.000000e+00> : vector<8x8x8xf32>
    %29 = tpu.matmul %16, %22, %cst_6 {dimension_numbers = #tpu.dot_dimension_numbers<[2], [2], [1], [1], [0, 0, 0, 1, 1, 1], [0], [0]>} : vector<8x8x8xf32>, vector<8x8x8xf32>, vector<8x8x8xf32> -> vector<8x8x8xf32>
    "tpu.trace_stop"() : () -> ()
    %cst_7 = arith.constant dense<0xFF800000> : vector<8x8xf32>
    %30 = vector.multi_reduction <maximumf>, %29, %cst_7 [2] : vector<8x8x8xf32> to vector<8x8xf32>
    %31 = vector.shape_cast %30 : vector<8x8xf32> to vector<8x8x1xf32>
    %32 = vector.broadcast %31 : vector<8x8x1xf32> to vector<8x8x8xf32>
    %33 = arith.subf %29, %32 : vector<8x8x8xf32>
    %34 = math.exp %33 : vector<8x8x8xf32>
    %cst_8 = arith.constant dense<0.000000e+00> : vector<8x8xf32>
    %35 = vector.multi_reduction <add>, %34, %cst_8 [2] : vector<8x8x8xf32> to vector<8x8xf32>
    %36 = vector.shape_cast %35 : vector<8x8xf32> to vector<8x8x1xf32>
    %37 = vector.broadcast %36 : vector<8x8x1xf32> to vector<8x8x8xf32>
    %38 = arith.divf %34, %37 : vector<8x8x8xf32>
    "tpu.trace_start"() <{level = 10 : i32, message = "bqk,bkd->bqd"}> : () -> ()
    %cst_9 = arith.constant dense<0.000000e+00> : vector<8x8x8xf32>
    %39 = tpu.matmul %38, %28, %cst_9 {dimension_numbers = #tpu.dot_dimension_numbers<[2], [1], [1], [2], [0, 0, 0, 1, 1, 2], [0], [0]>} : vector<8x8x8xf32>, vector<8x8x8xf32>, vector<8x8x8xf32> -> vector<8x8x8xf32>
    "tpu.trace_stop"() : () -> ()
    %40 = vector.extract_strided_slice %39 {offsets = [0, 0, 0], sizes = [2, 8, 8], strides = [1, 1, 1]} : vector<8x8x8xf32> to vector<2x8x8xf32>
    %41 = vector.extract_strided_slice %39 {offsets = [2, 0, 0], sizes = [2, 8, 8], strides = [1, 1, 1]} : vector<8x8x8xf32> to vector<2x8x8xf32>
    %42 = vector.extract_strided_slice %39 {offsets = [4, 0, 0], sizes = [2, 8, 8], strides = [1, 1, 1]} : vector<8x8x8xf32> to vector<2x8x8xf32>
    %43 = vector.extract_strided_slice %39 {offsets = [6, 0, 0], sizes = [2, 8, 8], strides = [1, 1, 1]} : vector<8x8x8xf32> to vector<2x8x8xf32>
    %44 = tpu.concatenate %40, %41, %42, %43 in 2 : vector<2x8x8xf32>, vector<2x8x8xf32>, vector<2x8x8xf32>, vector<2x8x8xf32> -> vector<2x8x32xf32>
    %45 = vector.shape_cast %44 : vector<2x8x32xf32> to vector<16x32xf32>
    %c0_10 = arith.constant 0 : index
    %c0_11 = arith.constant 0 : index
    %46 = vector.load %arg7[%c0_10, %c0_11] : memref<6x32xf32, #tpu.memory_space<vmem>>, vector<6x32xf32>
    %47 = vector.extract_strided_slice %46 {offsets = [0, 0], sizes = [1, 32], strides = [1, 1]} : vector<6x32xf32> to vector<1x32xf32>
    %48 = vector.extract_strided_slice %46 {offsets = [1, 0], sizes = [1, 32], strides = [1, 1]} : vector<6x32xf32> to vector<1x32xf32>
    %49 = vector.extract_strided_slice %46 {offsets = [2, 0], sizes = [1, 32], strides = [1, 1]} : vector<6x32xf32> to vector<1x32xf32>
    %50 = vector.extract_strided_slice %46 {offsets = [3, 0], sizes = [1, 32], strides = [1, 1]} : vector<6x32xf32> to vector<1x32xf32>
    %51 = vector.extract_strided_slice %46 {offsets = [4, 0], sizes = [1, 32], strides = [1, 1]} : vector<6x32xf32> to vector<1x32xf32>
    %52 = vector.extract_strided_slice %46 {offsets = [5, 0], sizes = [1, 32], strides = [1, 1]} : vector<6x32xf32> to vector<1x32xf32>
    %c0_12 = arith.constant 0 : index
    %c0_13 = arith.constant 0 : index
    %53 = vector.load %arg3[%c0_12, %c0_13] : memref<32x32xf32, #tpu.memory_space<vmem>>, vector<32x32xf32>
    %cst_14 = arith.constant dense<0.000000e+00> : vector<16x32xf32>
    %54 = tpu.matmul %45, %53, %cst_14 {dimension_numbers = #tpu.dot_dimension_numbers<[1], [0], [0], [1], [0, 0, 1, 1], [], []>} : vector<16x32xf32>, vector<32x32xf32>, vector<16x32xf32> -> vector<16x32xf32>
    %55 = vector.broadcast %47 : vector<1x32xf32> to vector<16x32xf32>
    %56 = arith.addf %54, %55 : vector<16x32xf32>
    %57 = arith.addf %0, %56 : vector<16x32xf32>
    %cst_15 = arith.constant dense<0.000000e+00> : vector<16xf32>
    %58 = vector.multi_reduction <add>, %57, %cst_15 [1] : vector<16x32xf32> to vector<16xf32>
    %59 = vector.shape_cast %58 : vector<16xf32> to vector<16x1xf32>
    %cst_16 = arith.constant 3.200000e+01 : f32
    %60 = vector.broadcast %cst_16 : f32 to vector<16x1xf32>
    %61 = arith.divf %59, %60 : vector<16x1xf32>
    %62 = vector.broadcast %61 : vector<16x1xf32> to vector<16x32xf32>
    %63 = arith.subf %57, %62 : vector<16x32xf32>
    %64 = arith.mulf %63, %63 : vector<16x32xf32>
    %cst_17 = arith.constant dense<0.000000e+00> : vector<16xf32>
    %65 = vector.multi_reduction <add>, %64, %cst_17 [1] : vector<16x32xf32> to vector<16xf32>
    %66 = vector.shape_cast %65 : vector<16xf32> to vector<16x1xf32>
    %cst_18 = arith.constant 3.200000e+01 : f32
    %67 = vector.broadcast %cst_18 : f32 to vector<16x1xf32>
    %68 = arith.divf %66, %67 : vector<16x1xf32>
    %69 = vector.broadcast %61 : vector<16x1xf32> to vector<16x32xf32>
    %70 = arith.subf %57, %69 : vector<16x32xf32>
    %cst_19 = arith.constant 9.99999974E-6 : f32
    %71 = vector.broadcast %cst_19 : f32 to vector<16x1xf32>
    %72 = arith.addf %68, %71 : vector<16x1xf32>
    %73 = math.rsqrt %72 : vector<16x1xf32>
    %74 = vector.broadcast %73 : vector<16x1xf32> to vector<16x32xf32>
    %75 = arith.mulf %70, %74 : vector<16x32xf32>
    %76 = vector.broadcast %48 : vector<1x32xf32> to vector<16x32xf32>
    %77 = arith.mulf %75, %76 : vector<16x32xf32>
    %78 = vector.broadcast %49 : vector<1x32xf32> to vector<16x32xf32>
    %79 = arith.addf %77, %78 : vector<16x32xf32>
    %c0_20 = arith.constant 0 : index
    %c0_21 = arith.constant 0 : index
    %80 = vector.load %arg4[%c0_20, %c0_21] : memref<32x64xf32, #tpu.memory_space<vmem>>, vector<32x64xf32>
    %cst_22 = arith.constant dense<0.000000e+00> : vector<16x64xf32>
    %81 = tpu.matmul %79, %80, %cst_22 {dimension_numbers = #tpu.dot_dimension_numbers<[1], [0], [0], [1], [0, 0, 1, 1], [], []>} : vector<16x32xf32>, vector<32x64xf32>, vector<16x64xf32> -> vector<16x64xf32>
    %c0_23 = arith.constant 0 : index
    %c0_24 = arith.constant 0 : index
    %82 = vector.load %arg5[%c0_23, %c0_24] : memref<1x64xf32, #tpu.memory_space<vmem>>, vector<1x64xf32>
    %83 = vector.broadcast %82 : vector<1x64xf32> to vector<16x64xf32>
    %84 = arith.addf %81, %83 : vector<16x64xf32>
    %cst_25 = arith.constant 0.000000e+00 : f32
    %85 = vector.broadcast %cst_25 : f32 to vector<16x64xf32>
    %86 = arith.maximumf %84, %85 : vector<16x64xf32>
    %c0_26 = arith.constant 0 : index
    %c0_27 = arith.constant 0 : index
    %87 = vector.load %arg6[%c0_26, %c0_27] : memref<64x32xf32, #tpu.memory_space<vmem>>, vector<64x32xf32>
    %cst_28 = arith.constant dense<0.000000e+00> : vector<16x32xf32>
    %88 = tpu.matmul %86, %87, %cst_28 {dimension_numbers = #tpu.dot_dimension_numbers<[1], [0], [0], [1], [0, 0, 1, 1], [], []>} : vector<16x64xf32>, vector<64x32xf32>, vector<16x32xf32> -> vector<16x32xf32>
    %89 = vector.broadcast %50 : vector<1x32xf32> to vector<16x32xf32>
    %90 = arith.addf %88, %89 : vector<16x32xf32>
    %91 = arith.addf %79, %90 : vector<16x32xf32>
    %cst_29 = arith.constant dense<0.000000e+00> : vector<16xf32>
    %92 = vector.multi_reduction <add>, %91, %cst_29 [1] : vector<16x32xf32> to vector<16xf32>
    %93 = vector.shape_cast %92 : vector<16xf32> to vector<16x1xf32>
    %cst_30 = arith.constant 3.200000e+01 : f32
    %94 = vector.broadcast %cst_30 : f32 to vector<16x1xf32>
    %95 = arith.divf %93, %94 : vector<16x1xf32>
    %96 = vector.broadcast %95 : vector<16x1xf32> to vector<16x32xf32>
    %97 = arith.subf %91, %96 : vector<16x32xf32>
    %98 = arith.mulf %97, %97 : vector<16x32xf32>
    %cst_31 = arith.constant dense<0.000000e+00> : vector<16xf32>
    %99 = vector.multi_reduction <add>, %98, %cst_31 [1] : vector<16x32xf32> to vector<16xf32>
    %100 = vector.shape_cast %99 : vector<16xf32> to vector<16x1xf32>
    %cst_32 = arith.constant 3.200000e+01 : f32
    %101 = vector.broadcast %cst_32 : f32 to vector<16x1xf32>
    %102 = arith.divf %100, %101 : vector<16x1xf32>
    %103 = vector.broadcast %95 : vector<16x1xf32> to vector<16x32xf32>
    %104 = arith.subf %91, %103 : vector<16x32xf32>
    %cst_33 = arith.constant 9.99999974E-6 : f32
    %105 = vector.broadcast %cst_33 : f32 to vector<16x1xf32>
    %106 = arith.addf %102, %105 : vector<16x1xf32>
    %107 = math.rsqrt %106 : vector<16x1xf32>
    %108 = vector.broadcast %107 : vector<16x1xf32> to vector<16x32xf32>
    %109 = arith.mulf %104, %108 : vector<16x32xf32>
    %110 = vector.broadcast %51 : vector<1x32xf32> to vector<16x32xf32>
    %111 = arith.mulf %109, %110 : vector<16x32xf32>
    %112 = vector.broadcast %52 : vector<1x32xf32> to vector<16x32xf32>
    %113 = arith.addf %111, %112 : vector<16x32xf32>
    %c0_34 = arith.constant 0 : index
    %c0_35 = arith.constant 0 : index
    %114 = vector.load %arg8[%c0_34, %c0_35] : memref<16x32xf32, #tpu.memory_space<vmem>>, vector<16x32xf32>
    tpu.vector_store %arg8[%c0_34, %c0_35], %113 {strides = array<i32>} : memref<16x32xf32, #tpu.memory_space<vmem>>, vector<16x32xf32>,
    return
  }
}

</mosaic_0001>

<bundles_post_ra>
// kernel: tpu_custom_call.1
= control target key start
LH: loop header
LB: loop body
LE: loop exit
PB: predicated region body
PF: predicated region fallthrough
CT: control target
= control target key end

     0   :  { %13 = vsyncpa [#allocation3], 0  ;;  %s2579_s0 = inlined_call_operand.hbm [shape: f32[16,32], index: 0, kind: input, shape index: {}]   ;;  %s2580_s1 = inlined_call_operand.vmem [shape: f32[32,96], index: 1, kind: input, shape index: {}]   ;;  %s2581_s2 = inlined_call_operand.vmem [shape: f32[1,96], index: 2, kind: input, shape index: {}]   ;;  %s2582_s3 = inlined_call_operand.vmem [shape: f32[32,32], index: 3, kind: input, shape index: {}]   ;;  %s2583_s4 = inlined_call_operand.vmem [shape: f32[32,64], index: 4, kind: input, shape index: {}]   ;;  %s2584_s5 = inlined_call_operand.hbm [shape: f32[1,64], index: 5, kind: input, shape index: {}]   ;;  %s2585_s6 = inlined_call_operand.vmem [shape: f32[64,32], index: 6, kind: input, shape index: {}]   ;;  %s2586_s7 = inlined_call_operand.vmem [shape: f32[6,32], index: 7, kind: input, shape index: {}]   ;;  %s2587_s8 = inlined_call_operand.hbm [shape: f32[16,32], index: 8, kind: output, shape index: {}]  }
   0x1   :  { %14 = vsyncpa [#allocation6], 0 }
   0x2   :  { %15 = vsyncpa [#allocation4], 0  ;;  %s2243_s27 = smov [#allocation2]  }
   0x3   :  { %s21_s28 = sshll.u32 %s2243_s27, 4  ;;  %s22_s28 = int_to_ptr.vmem [resolvable:$true] %s21_s28 }
   0x4   :  { %s2185_s29 = scalar_lea.vmem %s22_s28, 256  ;;  %p2190_p1 = scmp.lt.s32.totalorder %s22_s28, %s22_s28 }
   0x5   :  { %p2186_p0 = scmp.ne.s32.totalorder %s22_s28, %s2185_s29  ;;  %p2191_p2 = scmp.lt.s32.totalorder %s2185_s29, %s2185_s29 }
   0x7   :  { %p2192_p3 = por %p2191_p2, %p2190_p1 }
   0x9   :  { %p2193_p4 = pnand %p2192_p3, %p2186_p0 }
   0xb   :  { %2196 = shalt.err (!%p2193_p4)
}
   0xc   :  { %s2244_s30 = smov 128   ;;  %s2245_s9 = smov 8  }
   0xd   :  { %27 = dma.hbm_to_vmem [thread:$0]  %s2579_s0, 256, %s22_s28, [#allocation3], %s2244_s30, %s2244_s30, %s2245_s9  }
   0xe   :  { %s2246_s12 = smov [#allocation5]  }
   0xf   :  { %s42_s13 = sshll.u32 %s2246_s12, 4  ;;  %s43_s13 = int_to_ptr.vmem [resolvable:$true] %s42_s13 }
  0x10   :  { %s2205_s14 = scalar_lea.vmem %s43_s13, 16  ;;  %s2209_s15 = scalar_lea.vmem %s43_s13, 32 }
  0x11   :  { %p2206_p5 = scmp.ne.s32.totalorder %s43_s13, %s2205_s14  ;;  %p2210_p6 = scmp.lt.s32.totalorder %s43_s13, %s43_s13 }
  0x12   :  { %p2211_p7 = scmp.lt.s32.totalorder %s2209_s15, %s2205_s14 }
  0x14   :  { %p2212_p8 = por %p2211_p7, %p2210_p6 }
  0x16   :  { %p2213_p9 = pnand %p2212_p8, %p2206_p5 }
  0x18   :  { %2216 = shalt.err (!%p2213_p9)
}
  0x19   :  { %45 = dma.hbm_to_vmem [thread:$0]  %s2584_s5, 16, %s43_s13, [#allocation6]  }
  0x1a   :  { %2237 = dma.done.wait [#allocation3], 256  }
  0x1b   :  { %2238 = vsyncadd [#allocation3], 4294967040 }
  0x1c   :  { %2239 = dma.done.wait [#allocation6], 16  }
  0x1d   :  { %2240 = vsyncadd [#allocation6], 4294967280  ;;  %vm69_vm0 = vcmask 261120   ;;  %v61_v0 = vld [vmem:[%s2580_s1 + $0x18] sm:$0xff]  ;;  %v60_v1 = vld [vmem:[%s2580_s1 + $0x10] sm:$0xff]  ;;  %v2247_v7 = vmov 0.0  }
  0x1e   :  { %1991 = vmatprep.subr.mxu1 %v61_v0  ;;  %v2317_v2 = vld [vmem:[#allocation2] sm:$0xff]  ;;  %v59_v3 = vld [vmem:[%s2580_s1 + $0x8] sm:$0xff]  ;;  %2012 = vmatprep.subr.mxu0 %v2247_v7  ;;  %s2249_s26 = smov 120   ;;  %vm2250_vm1 = vmmov 0   ;;  %s2252_s27 = smov 96   ;;  %vm183_vm2 = vcmask 64512  }
  0x1f   :  { %1992 = vmatpush3.msra.mxu1 %v61_v0  ;;  %1999 = vmatprep.mubr.msk.f32.mxu1 %vm69_vm0, %v2317_v2  ;;  %v58_v4 = vld [vmem:[%s2580_s1] sm:$0xff]  ;;  %v2327_v5 = vld [vmem:[#allocation2 + $0x8] sm:$0xff]  ;;  %s2248_s1 = smov 112   ;;  %s2253_s28 = smov 64   ;;  %vm1512_vm3 = vcmask 130048   ;;  %vm1515_vm4 = vcmask 195584  }
  0x20   :  { %1993 = vmatprep.subr.mxu1 %v60_v1  ;;  %v1897_v8 = vld [vmem:[%s2581_s2] ss:$0 sm:$0xff]  ;;  %2014 = vmatprep.mubr.msk.f32.mxu0 %vm2250_vm1, %v2247_v7  ;;  %s2251_s2 = smov 104   ;;  %s2254_s17 = smov 16   ;;  %vm1755_vm5 = vcmask 523264  }
  0x21   :  { %1994 = vmatpush3.msra.mxu1 %v60_v1 }
  0x22   :  { %1995 = vmatprep.subr.mxu1 %v59_v3 }
  0x23   :  { %1996 = vmatpush3.msra.mxu1 %v59_v3 }
  0x24   :  { %1997 = vmatprep.subr.mxu1 %v58_v4 }
  0x25   :  { %1998 = vmatpush3.msra.mxu1 %v58_v4 }
  0x26   :  { %2000 = vmatmul.mubr.msk.f32.vlgmr.msra.gmra.mxu1 %vm69_vm0, %v2327_v5  ;;  %2002 = vmatprep.subr.mxu1 %v2247_v7 }
  0x27   :  { %2004 = vmatprep.mubr.msk.f32.mxu1 %vm2250_vm1, %v2247_v7 }
  0xe6   :  { %v2001_v6 = vpop.f32.mrf.mxu1 }
  0xe7   :  { %v2344_v11 = vadd.f32 %v2001_v6, %v1897_v8 }
  0xe8   :  { %v142_v9 = vpop.f32.mrf.mxu1 }
  0xe9   :  { %v2336_v10 = vadd.f32 %v1897_v8, %v142_v9  ;;  %v152_v12 = vmul.f32 0.17677669, %v2344_v11 }
  0xeb   :  { %173 = vrot.lane.b32.xlu1 %v2336_v10, %s2248_s1  ;;  %169 = vrot.lane.b32.xlu0 %v2336_v10, %s2249_s26  ;;  %v151_v13 = vmul.f32 0.17677669, %v2336_v10 }
  0xef   :  { %175 = vrot.lane.b32.xlu1 %v2344_v11, %s2248_s1  ;;  %171 = vrot.lane.b32.xlu0 %v2344_v11, %s2249_s26 }
  0xf3   :  { %179 = vrot.lane.b32.xlu1 %v2344_v11, %s2251_s2  ;;  %177 = vrot.lane.b32.xlu0 %v2336_v10, %s2251_s2 }
  0xf7   :  { %258 = vrot.lane.b32.xlu1 %v2344_v11, %s2252_s27  ;;  %181 = vrot.lane.b32.xlu0 %v2336_v10, %s2252_s27 }
  0xfb   :  { %157 = vrot.lane.b32.xlu1 %v152_v12, %s2249_s26  ;;  %155 = vrot.lane.b32.xlu0 %v151_v13, %s2249_s26 }
  0xff   :  { %161 = vrot.lane.b32.xlu1 %v152_v12, %s2248_s1  ;;  %159 = vrot.lane.b32.xlu0 %v151_v13, %s2248_s1 }
 0x15d   :  { %v2356_v14 = vpop.permute.xlu1 %173  ;;  %v2358_v15 = vpop.permute.xlu0 %169 }
 0x15e   :  { %334 = vrot.lane.b32.xlu0 %v2358_v15, %s2252_s27 }
 0x161   :  { %v2361_v16 = vpop.permute.xlu1 %175  ;;  %v2363_v17 = vpop.permute.xlu0 %171 }
 0x162   :  { %410 = vrot.lane.b32.xlu1 %v2363_v17, %s2252_s27  ;;  %486 = vrot.lane.b32.xlu0 %v2356_v14, %s2252_s27 }
 0x165   :  { %v2367_v18 = vpop.permute.xlu0 %177  ;;  %v2371_v19 = vpop.permute.xlu1 %179 }
 0x166   :  { %562 = vrot.lane.b32.xlu1 %v2361_v16, %s2252_s27  ;;  %638 = vrot.lane.b32.xlu0 %v2367_v18, %s2252_s27 }
 0x169   :  { %v182_v20 = vpop.permute.xlu0 %181  ;;  %v259_v21 = vpop.permute.xlu1 %258 }
 0x16a   :  { %714 = vrot.lane.b32.xlu1 %v2371_v19, %s2252_s27  ;;  %2003 = vmatpush3.xpose.msk.msra.mxu1 %vm183_vm2, %v182_v20 }
 0x16b   :  { %163 = vrot.lane.b32.xlu0 %v151_v13, %s2251_s2  ;;  %2007 = vmatprep.subr.mxu1 %v2247_v7 }
 0x16d   :  { %2005 = vmatmul.mubr.msk.f32.vlgmr.msra.gmra.mxu1 %vm183_vm2, %v151_v13  ;;  %v156_v22 = vpop.permute.xlu0 %155  ;;  %v158_v23 = vpop.permute.xlu1 %157 }
 0x16e   :  { %165 = vrot.lane.b32.xlu1 %v152_v12, %s2251_s2  ;;  %2008 = vmatpush3.xpose.msk.msra.mxu1 %vm183_vm2, %v259_v21 }
 0x16f   :  { %2009 = vmatprep.mubr.msk.f32.mxu1 %vm2250_vm1, %v2247_v7  ;;  %2017 = vmatprep.subr.mxu1 %v2247_v7 }
 0x171   :  { %2010 = vmatmul.mubr.msk.f32.vlgmr.msra.gmra.mxu1 %vm183_vm2, %v152_v12  ;;  %v160_v24 = vpop.permute.xlu0 %159  ;;  %v162_v25 = vpop.permute.xlu1 %161 }
 0x172   :  { %2019 = vmatprep.mubr.msk.f32.mxu1 %vm2250_vm1, %v2247_v7 }
 0x1d0   :  { %v335_v26 = vpop.permute.xlu0 %334 }
 0x1d1   :  { %2013 = vmatpush3.xpose.msk.msra.mxu0 %vm183_vm2, %v335_v26 }
 0x1d2   :  { %2022 = vmatprep.subr.mxu0 %v2247_v7 }
 0x1d4   :  { %v411_v27 = vpop.permute.xlu1 %410  ;;  %2015 = vmatmul.mubr.msk.f32.vlgmr.msra.gmra.mxu0 %vm183_vm2, %v156_v22  ;;  %v487_v28 = vpop.permute.xlu0 %486 }
 0x1d5   :  { %2018 = vmatpush3.xpose.msk.msra.mxu1 %vm183_vm2, %v411_v27  ;;  %2023 = vmatpush3.xpose.msk.msra.mxu0 %vm183_vm2, %v487_v28 }
 0x1d6   :  { %2024 = vmatprep.mubr.msk.f32.mxu0 %vm2250_vm1, %v2247_v7  ;;  %2032 = vmatprep.subr.mxu0 %v2247_v7 }
 0x1d7   :  { %2027 = vmatprep.subr.mxu1 %v2247_v7 }
 0x1d8   :  { %v563_v29 = vpop.permute.xlu1 %562  ;;  %2025 = vmatmul.mubr.msk.f32.vlgmr.msra.gmra.mxu0 %vm183_vm2, %v160_v24  ;;  %v639_v30 = vpop.permute.xlu0 %638  ;;  %2020 = vmatmul.mubr.msk.f32.vlgmr.msra.gmra.mxu1 %vm183_vm2, %v158_v23 }
 0x1d9   :  { %2028 = vmatpush3.xpose.msk.msra.mxu1 %vm183_vm2, %v563_v29  ;;  %2033 = vmatpush3.xpose.msk.msra.mxu0 %vm183_vm2, %v639_v30 }
 0x1da   :  { %2029 = vmatprep.mubr.msk.f32.mxu1 %vm2250_vm1, %v2247_v7  ;;  %2034 = vmatprep.mubr.msk.f32.mxu0 %vm2250_vm1, %v2247_v7 }
 0x1db   :  { %2037 = vmatprep.subr.mxu1 %v2247_v7  ;;  %2042 = vmatprep.subr.mxu0 %v2247_v7 }
 0x1dc   :  { %v715_v31 = vpop.permute.xlu1 %714  ;;  %2030 = vmatmul.mubr.msk.f32.vlgmr.msra.gmra.mxu1 %vm183_vm2, %v162_v25 }
 0x1dd   :  { %v164_v32 = vpop.permute.xlu0 %163  ;;  %2038 = vmatpush3.xpose.msk.msra.mxu1 %vm183_vm2, %v715_v31  ;;  %2039 = vmatprep.mubr.msk.f32.mxu1 %vm2250_vm1, %v2247_v7 }
 0x1de   :  { %2035 = vmatmul.mubr.msk.f32.vlgmr.msra.gmra.mxu0 %vm183_vm2, %v164_v32  ;;  %2047 = vmatprep.subr.mxu1 %v2247_v7 }
 0x1df   :  { %2044 = vmatprep.mubr.msk.f32.mxu0 %vm2250_vm1, %v2247_v7 }
 0x1e0   :  { %v166_v33 = vpop.permute.xlu1 %165 }
 0x1e1   :  { %2040 = vmatmul.mubr.msk.f32.vlgmr.msra.gmra.mxu1 %vm183_vm2, %v166_v33 }
 0x1e2   :  { %2049 = vmatprep.mubr.msk.f32.mxu1 %vm2250_vm1, %v2247_v7 }
 0x22d   :  { %v254_v34 = vpop.f32.mrf.mxu1 }
 0x22e   :  { %v790_v35 = vsel %vm183_vm2, %v254_v34, -inf }
 0x22f   :  { %791 = vmax.xlane.f32.xlu0 %v790_v35  ;;  %v2006_v36 = vpop.f32.mrf.mxu1 }
 0x231   :  { %v330_v37 = vpop.f32.mrf.mxu1 }
 0x232   :  { %v793_v38 = vsel %vm183_vm2, %v330_v37, -inf }
 0x233   :  { %794 = vmax.xlane.f32.xlu1 %v793_v38  ;;  %v2011_v39 = vpop.f32.mrf.mxu1 }
 0x294   :  { %v406_v40 = vpop.f32.mrf.mxu0 }
 0x295   :  { %v796_v41 = vsel %vm183_vm2, %v406_v40, -inf }
 0x296   :  { %v2016_v42 = vpop.f32.mrf.mxu0  ;;  %797 = vmax.xlane.f32.xlu0 %v796_v41 }
 0x298   :  { %v482_v43 = vpop.f32.mrf.mxu1  ;;  %v558_v44 = vpop.f32.mrf.mxu0 }
 0x299   :  { %v802_v45 = vsel %vm183_vm2, %v558_v44, -inf  ;;  %v799_v46 = vsel %vm183_vm2, %v482_v43, -inf }
 0x29a   :  { %v2026_v47 = vpop.f32.mrf.mxu0  ;;  %803 = vmax.xlane.f32.xlu1 %v802_v45  ;;  %800 = vmax.xlane.f32.xlu0 %v799_v46  ;;  %v2021_v48 = vpop.f32.mrf.mxu1 }
 0x29c   :  { %v634_v49 = vpop.f32.mrf.mxu1 }
 0x29d   :  { %v805_v50 = vsel %vm183_vm2, %v634_v49, -inf }
 0x29e   :  { %v710_v51 = vpop.f32.mrf.mxu0  ;;  %806 = vmax.xlane.f32.xlu0 %v805_v50  ;;  %v2031_v52 = vpop.f32.mrf.mxu1 }
 0x29f   :  { %v808_v53 = vsel %vm183_vm2, %v710_v51, -inf }
 0x2a0   :  { %v2036_v54 = vpop.f32.mrf.mxu0  ;;  %809 = vmax.xlane.f32.xlu1 %v808_v53 }
 0x2a1   :  { %v786_v55 = vpop.f32.mrf.mxu1 }
 0x2a2   :  { %v811_v56 = vsel %vm183_vm2, %v786_v55, -inf }
 0x2a3   :  { %812 = vmax.xlane.f32.xlu0 %v811_v56  ;;  %v2041_v57 = vpop.f32.mrf.mxu1 }
 0x2b1   :  { %878 = vrot.lane.b32.xlu1 %v2336_v10, %s2253_s28 }
 0x2b5   :  { %1030 = vrot.lane.b32.xlu1 %v2358_v15, %s2253_s28 }
 0x2b8   :  { %v792_v60 = vpop.xlane.xlu0 %791 }
 0x2b9   :  { %1106 = vrot.lane.b32.xlu1 %v2363_v17, %s2253_s28  ;;  %954 = vrot.lane.b32.xlu0 %v2344_v11, %s2253_s28  ;;  %v814_v62 = vsub.f32 %v254_v34, %v792_v60 }
 0x2bb   :  { %v822_v63 = vmul.f32 1.442695, %v814_v62 }
 0x2bc   :  { %v795_v58 = vpop.xlane.xlu1 %794 }
 0x2bd   :  { %1258 = vrot.lane.b32.xlu1 %v2361_v16, %s2253_s28  ;;  %1182 = vrot.lane.b32.xlu0 %v2356_v14, %s2253_s28  ;;  %v815_v59 = vsub.f32 %v330_v37, %v795_v58 }
 0x2bf   :  { %v824_v61 = vmul.f32 1.442695, %v815_v59 }
 0x2c1   :  { %2137 = vpow2.f32 %v824_v61 }
 0x2c2   :  { %2139 = vpow2.f32 %v822_v63 }
 0x2ce   :  { %v2436_v0 = vpop.eup %2137 }
 0x2cf   :  { %v841_v1 = vsel %vm183_vm2, %v2436_v0, 0.0  ;;  %v2440_v3 = vpop.eup %2139 }
 0x2d0   :  { %v838_v4 = vsel %vm183_vm2, %v2440_v3, 0.0 }
 0x2dc   :  { %842 = vadd.xlane.f32.xlu0 %v841_v1 }
 0x2e1   :  { %839 = vadd.xlane.f32.xlu1 %v838_v4 }
 0x31f   :  { %v798_v6 = vpop.xlane.xlu0 %797 }
 0x320   :  { %v816_v8 = vsub.f32 %v406_v40, %v798_v6 }
 0x322   :  { %v826_v9 = vmul.f32 1.442695, %v816_v8 }
 0x323   :  { %v804_v10 = vpop.xlane.xlu1 %803  ;;  %v801_v11 = vpop.xlane.xlu0 %800 }
 0x324   :  { %2141 = vpow2.f32 %v826_v9  ;;  %v818_v12 = vsub.f32 %v558_v44, %v804_v10  ;;  %v817_v13 = vsub.f32 %v482_v43, %v801_v11 }
 0x326   :  { %v830_v14 = vmul.f32 1.442695, %v818_v12  ;;  %v828_v15 = vmul.f32 1.442695, %v817_v13  ;;  %v1522_v12 = vld [vmem:[%s2582_s3 + $0x18] sm:$0xff]  ;;  %v1521_v13 = vld [vmem:[%s2582_s3 + $0x10] sm:$0xff] }
 0x327   :  { %v807_v16 = vpop.xlane.xlu0 %806 }
 0x328   :  { %2143 = vpow2.f32 %v830_v14  ;;  %v819_v17 = vsub.f32 %v634_v49, %v807_v16  ;;  %v1519_v14 = vld [vmem:[%s2582_s3] sm:$0xff] }
 0x329   :  { %2145 = vpow2.f32 %v828_v15  ;;  %v810_v20 = vpop.xlane.xlu1 %809 }
 0x32a   :  { %v832_v21 = vmul.f32 1.442695, %v819_v17  ;;  %v820_v22 = vsub.f32 %v710_v51, %v810_v20 }
 0x32c   :  { %2147 = vpow2.f32 %v832_v21  ;;  %v834_v23 = vmul.f32 1.442695, %v820_v22  ;;  %v813_v24 = vpop.xlane.xlu0 %812 }
 0x32d   :  { %v879_v25 = vpop.permute.xlu1 %878  ;;  %v821_v26 = vsub.f32 %v786_v55, %v813_v24 }
 0x32e   :  { %2149 = vpow2.f32 %v834_v23  ;;  %2043 = vmatpush3.msra.mxu0 %v879_v25 }
 0x32f   :  { %v836_v27 = vmul.f32 1.442695, %v821_v26  ;;  %2052 = vmatprep.subr.mxu0 %v2247_v7 }
 0x330   :  { %v955_v28 = vpop.permute.xlu0 %954 }
 0x331   :  { %v2142_v29 = vpop.eup %2141  ;;  %2151 = vpow2.f32 %v836_v27  ;;  %2048 = vmatpush3.msra.mxu1 %v955_v28  ;;  %v1031_v41 = vpop.permute.xlu1 %1030 }
 0x332   :  { %v844_v30 = vsel %vm183_vm2, %v2142_v29, 0.0  ;;  %2057 = vmatprep.subr.mxu1 %v2247_v7 }
 0x333   :  { %845 = vadd.xlane.f32.xlu1 %v844_v30 }
 0x334   :  { %v1183_v43 = vpop.permute.xlu0 %1182 }
 0x335   :  { %v2144_v31 = vpop.eup %2143  ;;  %v1107_v42 = vpop.permute.xlu1 %1106 }
 0x336   :  { %v2146_v32 = vpop.eup %2145  ;;  %v850_v33 = vsel %vm183_vm2, %v2144_v31, 0.0 }
 0x337   :  { %851 = vadd.xlane.f32.xlu1 %v850_v33  ;;  %v847_v34 = vsel %vm183_vm2, %v2146_v32, 0.0 }
 0x338   :  { %848 = vadd.xlane.f32.xlu0 %v847_v34 }
 0x339   :  { %v2148_v35 = vpop.eup %2147  ;;  %v1259_v45 = vpop.permute.xlu1 %1258 }
 0x33a   :  { %v853_v36 = vsel %vm183_vm2, %v2148_v35, 0.0 }
 0x33b   :  { %v2150_v37 = vpop.eup %2149 }
 0x33c   :  { %854 = vadd.xlane.f32.xlu0 %v853_v36  ;;  %v856_v38 = vsel %vm183_vm2, %v2150_v37, 0.0 }
 0x33d   :  { %857 = vadd.xlane.f32.xlu1 %v856_v38 }
 0x33e   :  { %v2451_v39 = vpop.eup %2151 }
 0x33f   :  { %v859_v40 = vsel %vm183_vm2, %v2451_v39, 0.0 }
 0x340   :  { %860 = vadd.xlane.f32.xlu0 %v859_v40 }
 0x34e   :  { %1410 = vrot.lane.b32.xlu1 %v2371_v19, %s2253_s28 }
 0x356   :  { %1334 = vrot.lane.b32.xlu0 %v2367_v18, %s2253_s28 }
 0x365   :  { %v843_v44 = vpop.xlane.xlu0 %842 }
 0x366   :  { %2153 = vrcp.f32 %v843_v44  ;;  %v2510_v44 = vld [vmem:[%s2586_s7] sm:$0x3f] }
 0x36a   :  { %v840_v46 = vpop.xlane.xlu1 %839 }
 0x36b   :  { %2155 = vrcp.f32 %v840_v46 }
 0x373   :  { %v2154_v47 = vpop.eup %2153 }
 0x374   :  { %v865_v48 = vmul.f32 %v2154_v47, %v2436_v0 }
 0x376   :  { %2050 = vmatmul.mubr.msk.f32.vlgmr.msra.gmra.mxu1 %vm183_vm2, %v865_v48 }
 0x377   :  { %2058 = vmatpush3.msra.mxu1 %v1107_v42  ;;  %2059 = vmatprep.mubr.msk.f32.mxu1 %vm2250_vm1, %v2247_v7 }
 0x378   :  { %v2156_v19 = vpop.eup %2155  ;;  %2067 = vmatprep.subr.mxu1 %v2247_v7 }
 0x379   :  { %v863_v18 = vmul.f32 %v2156_v19, %v2440_v3 }
 0x37b   :  { %2045 = vmatmul.mubr.msk.f32.vlgmr.msra.gmra.mxu0 %vm183_vm2, %v863_v18 }
 0x37c   :  { %2053 = vmatpush3.msra.mxu0 %v1031_v41  ;;  %2054 = vmatprep.mubr.msk.f32.mxu0 %vm2250_vm1, %v2247_v7  ;;  %v1523_v41 = vlaneseq }
 0x37d   :  { %2062 = vmatprep.subr.mxu0 %v2247_v7 }
 0x37e   :  { %v2504_v42 = vshrl.u32 %v1523_v41, 7 }
 0x3bc   :  { %v846_v49 = vpop.xlane.xlu1 %845 }
 0x3bd   :  { %2157 = vrcp.f32 %v846_v49 }
 0x3c0   :  { %v852_v50 = vpop.xlane.xlu1 %851 }
 0x3c1   :  { %2159 = vrcp.f32 %v852_v50  ;;  %v849_v51 = vpop.xlane.xlu0 %848 }
 0x3c2   :  { %2161 = vrcp.f32 %v849_v51 }
 0x3c5   :  { %v855_v52 = vpop.xlane.xlu0 %854 }
 0x3c6   :  { %2163 = vrcp.f32 %v855_v52  ;;  %v858_v53 = vpop.xlane.xlu1 %857 }
 0x3c7   :  { %2165 = vrcp.f32 %v858_v53 }
 0x3c9   :  { %v861_v54 = vpop.xlane.xlu0 %860 }
 0x3ca   :  { %v2158_v55 = vpop.eup %2157  ;;  %2167 = vrcp.f32 %v861_v54  ;;  %v1411_v3 = vpop.permute.xlu1 %1410 }
 0x3cb   :  { %v867_v56 = vmul.f32 %v2158_v55, %v2142_v29 }
 0x3cd   :  { %2055 = vmatmul.mubr.msk.f32.vlgmr.msra.gmra.mxu0 %vm183_vm2, %v867_v56  ;;  %v1335_v61 = vpop.permute.xlu0 %1334 }
 0x3ce   :  { %v2160_v57 = vpop.eup %2159  ;;  %2063 = vmatpush3.msra.mxu0 %v1183_v43  ;;  %2064 = vmatprep.mubr.msk.f32.mxu0 %vm2250_vm1, %v2247_v7  ;;  %v1525_v43 = vsub.s32 0, %v2504_v42 }
 0x3cf   :  { %v2162_v58 = vpop.eup %2161  ;;  %2072 = vmatprep.subr.mxu0 %v2247_v7  ;;  %v871_v59 = vmul.f32 %v2160_v57, %v2144_v31 }
 0x3d0   :  { %v869_v60 = vmul.f32 %v2162_v58, %v2146_v32 }
 0x3d1   :  { %2065 = vmatmul.mubr.msk.f32.vlgmr.msra.gmra.mxu0 %vm183_vm2, %v871_v59 }
 0x3d2   :  { %2060 = vmatmul.mubr.msk.f32.vlgmr.msra.gmra.mxu1 %vm183_vm2, %v869_v60  ;;  %2073 = vmatpush3.msra.mxu0 %v1335_v61  ;;  %v1651_v61 = vld [vmem:[%s2583_s4 + $0x10] sm:$0xff] }
 0x3d3   :  { %v2164_v62 = vpop.eup %2163  ;;  %2068 = vmatpush3.msra.mxu1 %v1259_v45  ;;  %2069 = vmatprep.mubr.msk.f32.mxu1 %vm2250_vm1, %v2247_v7  ;;  %v1526_v45 = vrot.slane %v2510_v44, %v1525_v43 }
 0x3d4   :  { %v2166_v63 = vpop.eup %2165  ;;  %2077 = vmatprep.subr.mxu1 %v2247_v7  ;;  %v873_v0 = vmul.f32 %v2164_v62, %v2148_v35  ;;  %2074 = vmatprep.mubr.msk.f32.mxu0 %vm2250_vm1, %v2247_v7  ;;  %v1650_v62 = vld [vmem:[%s2583_s4 + $0x8] sm:$0xff] }
 0x3d5   :  { %v875_v1 = vmul.f32 %v2166_v63, %v2150_v37  ;;  %2082 = vmatprep.subr.mxu0 %v1522_v12  ;;  %v1649_v63 = vld [vmem:[%s2583_s4] sm:$0xff] }
 0x3d6   :  { %2070 = vmatmul.mubr.msk.f32.vlgmr.msra.gmra.mxu1 %vm183_vm2, %v873_v0  ;;  %v1750_v0 = vld [vmem:[%s2585_s6 + $0x38] sm:$0xff] }
 0x3d7   :  { %v2168_v4 = vpop.eup %2167  ;;  %2078 = vmatpush3.msra.mxu1 %v1411_v3  ;;  %2075 = vmatmul.mubr.msk.f32.vlgmr.msra.gmra.mxu0 %vm183_vm2, %v875_v1  ;;  %v1749_v1 = vld [vmem:[%s2585_s6 + $0x30] sm:$0xff]  ;;  %v1748_v3 = vld [vmem:[%s2585_s6 + $0x28] sm:$0xff] }
 0x3d8   :  { %2079 = vmatprep.mubr.msk.f32.mxu1 %vm2250_vm1, %v2247_v7  ;;  %v877_v6 = vmul.f32 %v2168_v4, %v2451_v39  ;;  %2083 = vmatpush3.msra.mxu0 %v1522_v12  ;;  %v1520_v7 = vld [vmem:[%s2582_s3 + $0x8] sm:$0xff]  ;;  %s2255_s3 = smov 24   ;;  %v1747_v4 = vld [vmem:[%s2585_s6 + $0x20] sm:$0xff] }
 0x3d9   :  { %2084 = vmatprep.subr.mxu0 %v1521_v13 }
 0x3da   :  { %2080 = vmatmul.mubr.msk.f32.vlgmr.msra.gmra.mxu1 %vm183_vm2, %v877_v6  ;;  %2085 = vmatpush3.msra.mxu0 %v1521_v13  ;;  %v1639_v13 = vsub.s32 1, %v2504_v42 }
 0x3db   :  { %2086 = vmatprep.subr.mxu0 %v1520_v7 }
 0x3dc   :  { %2087 = vmatpush3.msra.mxu0 %v1520_v7  ;;  %v1645_v7 = vsub.s32 2, %v2504_v42 }
 0x3dd   :  { %2088 = vmatprep.subr.mxu0 %v1519_v14 }
 0x3de   :  { %2089 = vmatpush3.msra.mxu0 %v1519_v14  ;;  %v1640_v14 = vrot.slane %v2510_v44, %v1639_v13 }
 0x3df   :  { %2104 = vmatprep.subr.mxu0 %v1750_v0 }
 0x436   :  { %v1026_v8 = vpop.f32.mrf.mxu1 }
 0x438   :  { %v2051_v9 = vpop.f32.mrf.mxu1 }
 0x43b   :  { %v950_v10 = vpop.f32.mrf.mxu0 }
 0x43d   :  { %v2046_v11 = vpop.f32.mrf.mxu0 }
 0x48d   :  { %v1102_v15 = vpop.f32.mrf.mxu0 }
 0x48e   :  { %1488 = vrot.lane.b32.xlu0 %v1102_v15, %s2245_s9 }
 0x48f   :  { %v2056_v16 = vpop.f32.mrf.mxu0 }
 0x491   :  { %v1254_v17 = vpop.f32.mrf.mxu0 }
 0x492   :  { %v1178_v20 = vpop.f32.mrf.mxu1  ;;  %1496 = vrot.lane.b32.xlu0 %v1254_v17, %s2254_s17  ;;  %v1646_v17 = vrot.slane %v2510_v44, %v1645_v7 }
 0x493   :  { %1490 = vrot.lane.b32.xlu1 %v1178_v20, %s2245_s9  ;;  %v2066_v21 = vpop.f32.mrf.mxu0 }
 0x494   :  { %v2061_v22 = vpop.f32.mrf.mxu1 }
 0x496   :  { %v1330_v23 = vpop.f32.mrf.mxu1 }
 0x497   :  { %v1406_v24 = vpop.f32.mrf.mxu0  ;;  %1498 = vrot.lane.b32.xlu1 %v1330_v23, %s2254_s17 }
 0x498   :  { %1504 = vrot.lane.b32.xlu0 %v1406_v24, %s2255_s3  ;;  %v2071_v25 = vpop.f32.mrf.mxu1 }
 0x499   :  { %v2076_v26 = vpop.f32.mrf.mxu0 }
 0x49a   :  { %v1482_v27 = vpop.f32.mrf.mxu1  ;;  %v1746_v26 = vld [vmem:[%s2585_s6 + $0x18] sm:$0xff] }
 0x49b   :  { %1506 = vrot.lane.b32.xlu1 %v1482_v27, %s2255_s3  ;;  %v1745_v27 = vld [vmem:[%s2585_s6 + $0x10] sm:$0xff] }
 0x49c   :  { %v2081_v28 = vpop.f32.mrf.mxu1 }
 0x49d   :  { %v1744_v28 = vld [vmem:[%s2585_s6 + $0x8] sm:$0xff] }
 0x500   :  { %v1489_v29 = vpop.permute.xlu0 %1488 }
 0x501   :  { %v1510_v32 = vsel %vm183_vm2, %v950_v10, %v1489_v29  ;;  %v1743_v29 = vld [vmem:[%s2585_s6] sm:$0xff]  ;;  %s2256_s6 = smov [#allocation7]  }
 0x502   :  { %s1884_s3 = sshll.u32 %s2256_s6, 4  ;;  %s1885_s3 = int_to_ptr.vmem [resolvable:$true] %s1884_s3 }
 0x503   :  { %s2217_s0 = scalar_lea.vmem %s1885_s3, 256  ;;  %p2222_p11 = scmp.lt.s32.totalorder %s1885_s3, %s1885_s3 }
 0x504   :  { %v1497_v30 = vpop.permute.xlu0 %1496  ;;  %p2218_p10 = scmp.ne.s32.totalorder %s1885_s3, %s2217_s0  ;;  %p2223_p12 = scmp.lt.s32.totalorder %s2217_s0, %s2217_s0 }
 0x505   :  { %v1491_v31 = vpop.permute.xlu1 %1490  ;;  %v1513_v34 = vsel %vm1512_vm3, %v1510_v32, %v1497_v30  ;;  %v1926_v30 = vld [vmem:[#allocation5] ss:$0 sm:$0xff] }
 0x506   :  { %v1511_v37 = vsel %vm183_vm2, %v1026_v8, %v1491_v31  ;;  %p2224_p13 = por %p2223_p12, %p2222_p11 }
 0x508   :  { %p2225_p0 = pnand %p2224_p13, %p2218_p10 }
 0x509   :  { %v1499_v33 = vpop.permute.xlu1 %1498 }
 0x50a   :  { %v1505_v35 = vpop.permute.xlu0 %1504  ;;  %v1514_v38 = vsel %vm1512_vm3, %v1511_v37, %v1499_v33  ;;  %v1753_v37 = vsub.s32 3, %v2504_v42 }
 0x50b   :  { %v1516_v36 = vsel %vm1515_vm4, %v1513_v34, %v1505_v35 }
 0x50c   :  { %2090 = vmatprep.mubr.msk.f32.mxu0 %vm69_vm0, %v1516_v36 }
 0x50d   :  { %v1507_v39 = vpop.permute.xlu1 %1506 }
 0x50e   :  { %v1517_v40 = vsel %vm1515_vm4, %v1514_v38, %v1507_v39  ;;  %v1754_v38 = vrot.slane %v2510_v44, %v1753_v37 }
 0x50f   :  { %2091 = vmatmul.mubr.msk.f32.vlgmr.msra.gmra.mxu0 %vm69_vm0, %v1517_v40 }
 0x510   :  { %2105 = vmatpush3.msra.mxu0 %v1750_v0 }
 0x511   :  { %2106 = vmatprep.subr.mxu0 %v1749_v1 }
 0x512   :  { %2107 = vmatpush3.msra.mxu0 %v1749_v1 }
 0x513   :  { %2108 = vmatprep.subr.mxu0 %v1748_v3 }
 0x514   :  { %2109 = vmatpush3.msra.mxu0 %v1748_v3 }
 0x515   :  { %2110 = vmatprep.subr.mxu0 %v1747_v4 }
 0x516   :  { %2111 = vmatpush3.msra.mxu0 %v1747_v4 }
 0x517   :  { %2112 = vmatprep.subr.mxu0 %v1746_v26 }
 0x518   :  { %2113 = vmatpush3.msra.mxu0 %v1746_v26 }
 0x519   :  { %2114 = vmatprep.subr.mxu0 %v1745_v27 }
 0x51a   :  { %2115 = vmatpush3.msra.mxu0 %v1745_v27 }
 0x51b   :  { %2116 = vmatprep.subr.mxu0 %v1744_v28 }
 0x51c   :  { %2117 = vmatpush3.msra.mxu0 %v1744_v28 }
 0x51d   :  { %2118 = vmatprep.subr.mxu0 %v1743_v29 }
 0x51e   :  { %2119 = vmatpush3.msra.mxu0 %v1743_v29 }
 0x5cf   :  { %v2092_v46 = vpop.f32.mrf.mxu0 }
 0x5d0   :  { %v1605_v47 = vadd.f32 %v2092_v46, %v1526_v45 }
 0x5d1   :  { %v1599_v48 = vpop.f32.mrf.mxu0 }
 0x5d2   :  { %v1600_v19 = vadd.f32 %v1599_v48, %v1526_v45  ;;  %v1609_v18 = vadd.f32 %v1605_v47, %v2327_v5 }
 0x5d4   :  { %v1613_v49 = vsel %vm69_vm0, %v1609_v18, 0.0  ;;  %v1608_v50 = vadd.f32 %v1600_v19, %v2317_v2  ;;  %v1652_v2 = vld [vmem:[%s2583_s4 + $0x18] sm:$0xff] }
 0x5d5   :  { %1614 = vadd.xlane.f32.xlu1 %v1613_v49  ;;  %2093 = vmatprep.subr.mxu1 %v1652_v2 }
 0x5d6   :  { %v1610_v51 = vsel %vm69_vm0, %v1608_v50, 0.0  ;;  %2094 = vmatpush3.msra.mxu1 %v1652_v2 }
 0x5d7   :  { %1611 = vadd.xlane.f32.xlu0 %v1610_v51  ;;  %2095 = vmatprep.subr.mxu1 %v1651_v61 }
 0x5d8   :  { %2096 = vmatpush3.msra.mxu1 %v1651_v61  ;;  %v1867_v61 = vsub.s32 4, %v2504_v42 }
 0x5d9   :  { %2097 = vmatprep.subr.mxu1 %v1650_v62 }
 0x5da   :  { %2098 = vmatpush3.msra.mxu1 %v1650_v62  ;;  %v1873_v62 = vsub.s32 5, %v2504_v42 }
 0x5db   :  { %2099 = vmatprep.subr.mxu1 %v1649_v63 }
 0x5dc   :  { %2100 = vmatpush3.msra.mxu1 %v1649_v63  ;;  %v1868_v63 = vrot.slane %v2510_v44, %v1867_v61  ;;  %v1874_v3 = vrot.slane %v2510_v44, %v1873_v62 }
 0x65e   :  { %v1615_v52 = vpop.xlane.xlu1 %1614 }
 0x65f   :  { %v1618_v53 = vmul.f32 0.03125, %v1615_v52 }
 0x660   :  { %v1612_v54 = vpop.xlane.xlu0 %1611 }
 0x661   :  { %v1617_v55 = vmul.f32 0.03125, %v1612_v54  ;;  %v1620_v56 = vsub.f32 %v1609_v18, %v1618_v53 }
 0x663   :  { %v1619_v57 = vsub.f32 %v1608_v50, %v1617_v55  ;;  %v1622_v60 = vmul.f32 %v1620_v56, %v1620_v56 }
 0x665   :  { %v1621_v58 = vmul.f32 %v1619_v57, %v1619_v57  ;;  %v1626_v5 = vsel %vm69_vm0, %v1622_v60, 0.0 }
 0x667   :  { %v1623_v59 = vsel %vm69_vm0, %v1621_v58, 0.0 }
 0x668   :  { %1624 = vadd.xlane.f32.xlu0 %v1623_v59 }
 0x66c   :  { %1627 = vadd.xlane.f32.xlu0 %v1626_v5 }
 0x6f1   :  { %v1625_v6 = vpop.xlane.xlu0 %1624 }
 0x6f2   :  { %v1629_v8 = vmul.f32 0.03125, %v1625_v6 }
 0x6f4   :  { %v1631_v9 = vadd.f32 1e-05, %v1629_v8 }
 0x6f5   :  { %v1628_v10 = vpop.xlane.xlu0 %1627 }
 0x6f6   :  { %2169 = vrsqrt.f32 %v1631_v9  ;;  %v1630_v11 = vmul.f32 0.03125, %v1628_v10 }
 0x6f8   :  { %v1632_v12 = vadd.f32 1e-05, %v1630_v11 }
 0x6fa   :  { %2171 = vrsqrt.f32 %v1632_v12 }
 0x703   :  { %v2170_v15 = vpop.eup %2169 }
 0x704   :  { %v1635_v16 = vmul.f32 %v2170_v15, %v1619_v57 }
 0x706   :  { %v1641_v20 = vmul.f32 %v1640_v14, %v1635_v16 }
 0x707   :  { %v2172_v21 = vpop.eup %2171 }
 0x708   :  { %v1636_v22 = vmul.f32 %v2172_v21, %v1620_v56  ;;  %v1647_v23 = vadd.f32 %v1646_v17, %v1641_v20 }
 0x70a   :  { %v1642_v24 = vmul.f32 %v1640_v14, %v1636_v22  ;;  %2101 = vmatprep.mubr.msk.f32.mxu1 %vm69_vm0, %v1647_v23 }
 0x70c   :  { %v1648_v25 = vadd.f32 %v1646_v17, %v1642_v24 }
 0x70e   :  { %2102 = vmatmul.mubr.msk.f32.vlgmr.msra.gmra.mxu1 %vm69_vm0, %v1648_v25 }
 0x7ce   :  { %v2103_v31 = vpop.f32.mrf.mxu1 }
 0x7cf   :  { %v1738_v32 = vadd.f32 %v2103_v31, %v1926_v30 }
 0x7d0   :  { %v1732_v33 = vpop.f32.mrf.mxu1 }
 0x7d1   :  { %v1733_v34 = vadd.f32 %v1926_v30, %v1732_v33  ;;  %v1742_v36 = vmax.f32 %v1738_v32, 0.0 }
 0x7d3   :  { %v1741_v35 = vmax.f32 %v1733_v34, 0.0 }
 0x7d5   :  { %2120 = vmatprep.mubr.msk.f32.mxu0 %vm1755_vm5, %v1741_v35 }
 0x7d6   :  { %2121 = vmatmul.mubr.msk.f32.vlgmr.msra.gmra.mxu0 %vm1755_vm5, %v1742_v36 }
 0x896   :  { %v2122_v39 = vpop.f32.mrf.mxu0 }
 0x897   :  { %v1834_v40 = vadd.f32 %v2122_v39, %v1754_v38 }
 0x898   :  { %v1828_v41 = vpop.f32.mrf.mxu0 }
 0x899   :  { %v1829_v43 = vadd.f32 %v1828_v41, %v1754_v38  ;;  %v1838_v45 = vadd.f32 %v1834_v40, %v1648_v25 }
 0x89b   :  { %v1842_v46 = vsel %vm69_vm0, %v1838_v45, 0.0  ;;  %v1837_v47 = vadd.f32 %v1829_v43, %v1647_v23 }
 0x89c   :  { %1843 = vadd.xlane.f32.xlu0 %v1842_v46 }
 0x89d   :  { %v1839_v48 = vsel %vm69_vm0, %v1837_v47, 0.0 }
 0x89e   :  { %1840 = vadd.xlane.f32.xlu1 %v1839_v48 }
 0x925   :  { %v1844_v19 = vpop.xlane.xlu0 %1843 }
 0x926   :  { %v1846_v18 = vmul.f32 0.03125, %v1844_v19 }
 0x927   :  { %v1841_v49 = vpop.xlane.xlu1 %1840 }
 0x928   :  { %v1848_v50 = vsub.f32 %v1838_v45, %v1846_v18  ;;  %v1845_v51 = vmul.f32 0.03125, %v1841_v49 }
 0x92a   :  { %v1847_v52 = vsub.f32 %v1837_v47, %v1845_v51  ;;  %v1850_v53 = vmul.f32 %v1848_v50, %v1848_v50 }
 0x92c   :  { %v1854_v54 = vsel %vm69_vm0, %v1850_v53, 0.0  ;;  %v1849_v55 = vmul.f32 %v1847_v52, %v1847_v52 }
 0x92d   :  { %1855 = vadd.xlane.f32.xlu0 %v1854_v54 }
 0x92e   :  { %v1851_v56 = vsel %vm69_vm0, %v1849_v55, 0.0 }
 0x92f   :  { %1852 = vadd.xlane.f32.xlu1 %v1851_v56 }
 0x9b6   :  { %v1856_v57 = vpop.xlane.xlu0 %1855 }
 0x9b7   :  { %v1858_v58 = vmul.f32 0.03125, %v1856_v57 }
 0x9b8   :  { %v1853_v59 = vpop.xlane.xlu1 %1852 }
 0x9b9   :  { %v1860_v60 = vadd.f32 1e-05, %v1858_v58  ;;  %v1857_v5 = vmul.f32 0.03125, %v1853_v59 }
 0x9bb   :  { %2173 = vrsqrt.f32 %v1860_v60  ;;  %v1859_v2 = vadd.f32 1e-05, %v1857_v5 }
 0x9bd   :  { %2175 = vrsqrt.f32 %v1859_v2 }
 0x9c8   :  { %v2174_v0 = vpop.eup %2173 }
 0x9c9   :  { %v1864_v1 = vmul.f32 %v2174_v0, %v1848_v50 }
 0x9ca   :  { %v2176_v4 = vpop.eup %2175 }
 0x9cb   :  { %v1863_v6 = vmul.f32 %v2176_v4, %v1847_v52  ;;  %v1870_v8 = vmul.f32 %v1868_v63, %v1864_v1 }
 0x9cd   :  { %v1869_v9 = vmul.f32 %v1868_v63, %v1863_v6  ;;  %v1876_v10 = vadd.f32 %v1874_v3, %v1870_v8 }
 0x9cf   :  { %v1875_v11 = vadd.f32 %v1874_v3, %v1869_v9  ;;  %1878 = vst.msk [vmem:[#allocation7 + $0x8] sm:$0xff] %vm69_vm0, %v1876_v10 }
 0x9d1   :  { %1877 = vst.msk [vmem:[#allocation7] sm:$0xff] %vm69_vm0, %v1875_v11 }
 0x9d2   :  { %2228 = shalt.err (!%p2225_p0)
}
 0x9d3   :  { %1890 = dma.vmem_to_hbm [thread:$0]  %s1885_s3, 256, %s2587_s8, [#allocation4], %s2244_s30, %s2244_s30, %s2245_s9  }
 0x9d4   :  { %2241 = dma.done.wait [#allocation4], 256  }
 0x9d5   :  { %2242 = vsyncadd [#allocation4], 4294967040 }
 0x9d6   :  { %1894 = vsyncpa [#allocation3], 1 }
 0x9d7   :  { %1895 = vsyncpa [#allocation6], 1 }
 0x9d8   :  { %1896 = vsyncpa [#allocation4], 1 }

</bundles_post_ra>
